<compile_context>
chip_gen: v6e
topology: v6e:2x2x1
jax: 0.10.0
libtpu: 0.0.40
codegen_flags: <defaults>
</compile_context>

<pallas_src>
import functools

import jax
import jax.numpy as jnp
from jax import lax
from jax.experimental import pallas as pl
from jax.experimental.pallas import tpu as pltpu

_EPS = 1e-8  # CosineSimilarity norm clamp


def _round_up(x, m):
    return ((x + m - 1) // m) * m


def _vmem_budget_bytes():
    """Scoped-VMEM budget: half of physical VMEM, capped at 64 MiB (generation-aware)."""
    phys = 64 * 1024 * 1024  # conservative default (v7x per-core size)
    try:
        info = pltpu.get_tpu_info()
        phys = int(getattr(info, "vmem_capacity_bytes", phys) or phys)
    except Exception:
        pass
    return min(phys // 2, 64 * 1024 * 1024)


# ----------------------------------------------------------------------------
# Path 1: triangular tiled N^2 kernel (used when D is not much smaller than N).
# ----------------------------------------------------------------------------
def _tri_pairs_kernel(i_idx_ref, j_idx_ref, pr_ref, pc_ref, out_ref, acc_ref,
                      *, num_pairs):
    """One (i, j) upper-triangular tile pair of the cosine-similarity Gram.

    pr_ref, pc_ref: (T, Dp) row / col tiles of the PRE-NORMALIZED prototypes.
    out_ref:        (8, 128) f32 per-split partial sum (written once, on the last step).
    acc_ref:        (1, 1) f32 VMEM running partial for this split.
    """
    h = pl.program_id(0)            # split (parallel axis; v7x 2-TC sharding)
    s = pl.program_id(1)            # step within split (reduction axis)
    steps = pl.num_programs(1)
    flat = h * steps + s

    @pl.when(s == 0)
    def _init():
        acc_ref[...] = jnp.zeros_like(acc_ref)

    i = i_idx_ref[flat]
    j = j_idx_ref[flat]
    valid = flat < num_pairs        # padded tail pairs contribute nothing
    is_diag = i == j

    # Cosine-similarity tile: NT Gram of normalized rows on the MXU
    # (input dtype operands, f32 accumulation; no transposed copy is materialized).
    g = lax.dot_general(
        pr_ref[...], pc_ref[...],
        dimension_numbers=(((1,), (1,)), ((), ())),
        preferred_element_type=jnp.float32,
    )
    g2 = g * g

    @pl.when(jnp.logical_and(valid, jnp.logical_not(is_diag)))
    def _offdiag():
        # Strict upper-triangle tile: counts for itself and its mirror image.
        tile_sum = jnp.sum(jnp.sum(g2, axis=1, keepdims=True), axis=0, keepdims=True)
        acc_ref[...] += 2.0 * tile_sum

    @pl.when(jnp.logical_and(valid, is_diag))
    def _diag():
        # Diagonal tile: remove sim_aa^2 exactly (only nblk tiles pay this mask).
        r = lax.broadcasted_iota(jnp.int32, g2.shape, 0)
        c = lax.broadcasted_iota(jnp.int32, g2.shape, 1)
        masked = jnp.where(r == c, 0.0, g2)
        tile_sum = jnp.sum(jnp.sum(masked, axis=1, keepdims=True), axis=0, keepdims=True)
        acc_ref[...] += tile_sum

    @pl.when(s == steps - 1)
    def _finalize():
        out_ref[...] = jnp.broadcast_to(acc_ref[...], out_ref.shape)


# ----------------------------------------------------------------------------
# Path 2: Gram-trick kernel for D << N:  sum_ab sim_ab^2 = ||A^T A||_F^2.
# ----------------------------------------------------------------------------
def _gram_frob_kernel(pnt_ref, out_ref, c_ref):
    """pnt_ref: (Dp, T) column block of the normalized prototypes, transposed.

    Accumulates C = A^T A over blocks (NT self-contraction on the MXU); on the last
    step emits ||C||_F^2 broadcast into the (8, 128) output tile.
    """
    s = pl.program_id(0)

    @pl.when(s == 0)
    def _init():
        c_ref[...] = jnp.zeros_like(c_ref)

    at = pnt_ref[...]                                    # (Dp, T)
    c_ref[...] += lax.dot_general(
        at, at,
        dimension_numbers=(((1,), (1,)), ((), ())),
        preferred_element_type=jnp.float32,
    )                                                    # (Dp, Dp)

    @pl.when(s == pl.num_programs(0) - 1)
    def _finalize():
        c = c_ref[...]
        frob = jnp.sum(jnp.sum(c * c, axis=1, keepdims=True), axis=0, keepdims=True)
        out_ref[...] = jnp.broadcast_to(frob, out_ref.shape)


# ----------------------------------------------------------------------------
# Wrapper.
# ----------------------------------------------------------------------------
def proto_similarity_loss(prototypes, *, tile=512, compute_dtype=None, use_gram=None):
    """prototypes: (N, D) array. Returns the scalar loss (float32)."""
    n, d = prototypes.shape

    # --- O(N*D) prep in plain XLA: normalize rows once (f32), then cast / pad.
    p32 = prototypes.astype(jnp.float32)
    norms = jnp.sqrt(jnp.sum(p32 * p32, axis=-1, keepdims=True))
    pn32 = p32 / jnp.maximum(norms, _EPS)

    # TODO(synk): on v5e, compute_dtype=jnp.bfloat16 is ~3x faster (f32 MXU is multi-pass
    # emulated there) at a small precision cost; left opt-in to preserve f32 accuracy.
    cdt = compute_dtype if compute_dtype is not None else prototypes.dtype
    pn = pn32.astype(cdt)
    itemsize = jnp.dtype(cdt).itemsize
    pack = max(8, 32 // itemsize)            # sublane packing minimum for the dtype

    dp = _round_up(d, 128)                   # lane-dense feature dim
    budget = _vmem_budget_bytes()            # scoped VMEM limit (generation-aware)

    # --- Path dispatch: Gram trick when D << N and the (Dp, Dp) accumulator fits.
    if use_gram is None:
        use_gram = (n >= 2 * dp) and (2 * dp * dp * 4 <= budget // 2)

    if use_gram:
        # Column-block tile along N (lane axis of the transposed array) -> mult of 128.
        t = min(max(128, _round_up(tile, 128)), _round_up(n, 128))
        while t > 128 and (2 * dp * t * itemsize + 2 * dp * dp * 4) > 0.8 * budget:
            t = max(128, _round_up(t // 2, 128))
        npad = _round_up(n, t)
        nblk = npad // t

        pn_p = jnp.pad(pn, ((0, npad - n), (0, dp - d))) if (npad, dp) != (n, d) else pn
        pnt = pn_p.T                         # (Dp, npad) one-time XLA transpose

        cost = pl.CostEstimate(
            flops=2 * npad * dp * dp + 2 * dp * dp,
            transcendentals=0,
            bytes_accessed=npad * dp * itemsize + 8 * 128 * 4,
        )
        frob_tile = pl.pallas_call(
            _gram_frob_kernel,
            out_shape=jax.ShapeDtypeStruct((8, 128), jnp.float32),
            grid_spec=pltpu.PrefetchScalarGridSpec(
                num_scalar_prefetch=0,
                grid=(nblk,),
                in_specs=[pl.BlockSpec((dp, t), lambda s: (0, s))],
                out_specs=pl.BlockSpec((8, 128), lambda s: (0, 0)),
                scratch_shapes=[pltpu.VMEM((dp, dp), jnp.float32)],
            ),
            compiler_params=pltpu.CompilerParams(
                dimension_semantics=("arbitrary",),
                vmem_limit_bytes=budget,
            ),
            cost_estimate=cost,
        )(pnt)
        frob = frob_tile[0, 0]
        # Analytic diagonal removal: sum_a (||pn_a||^2)^2 over the values the MXU saw.
        pnc32 = pn_p.astype(jnp.float32)
        diag_sq = jnp.sum(jnp.square(jnp.sum(pnc32 * pnc32, axis=-1)))
        total = frob - diag_sq
        return 0.5 * total / jnp.float32(n * n)

    # --- Triangular tiled N^2 path.
    t = min(_round_up(tile, pack), _round_up(n, pack))
    # Keep double-buffered (T,Dp) inputs + (T,T) f32 Gram temporaries under budget.
    while t > 128 and (4 * t * dp * itemsize + 2 * t * t * 4) > 0.8 * budget:
        t = max(pack, _round_up(t // 2, pack))
    npad = _round_up(n, t)
    nblk = npad // t

    pn_p = jnp.pad(pn, ((0, npad - n), (0, dp - d))) if (npad, dp) != (n, d) else pn

    # Flattened upper-triangular (j >= i) tile-pair list, row-major so the row tile's
    # DMA only re-issues when i changes; split into two contiguous, balanced halves
    # for the "parallel" leading grid axis (v7x has 2 TensorCores).
    ii, jj = [], []
    for a in range(nblk):
        for b in range(a, nblk):
            ii.append(a)
            jj.append(b)
    num_pairs = len(ii)
    n_splits = 2 if num_pairs > 1 else 1
    steps = -(-num_pairs // n_splits)                  # cdiv
    while len(ii) < n_splits * steps:                  # pad (masked out in-kernel)
        ii.append(ii[-1])
        jj.append(jj[-1])
    i_idx = jnp.asarray(ii, dtype=jnp.int32)
    j_idx = jnp.asarray(jj, dtype=jnp.int32)

    cost = pl.CostEstimate(
        flops=num_pairs * (2 * t * t * dp + 3 * t * t),
        transcendentals=0,
        bytes_accessed=(num_pairs + nblk) * t * dp * itemsize + n_splits * 8 * 128 * 4,
    )

    kernel = functools.partial(_tri_pairs_kernel, num_pairs=num_pairs)
    partials = pl.pallas_call(
        kernel,
        out_shape=jax.ShapeDtypeStruct((n_splits * 8, 128), jnp.float32),
        grid_spec=pltpu.PrefetchScalarGridSpec(
            num_scalar_prefetch=2,
            grid=(n_splits, steps),
            in_specs=[
                pl.BlockSpec((t, dp), lambda h, s, ii, jj: (ii[h * steps + s], 0)),
                pl.BlockSpec((t, dp), lambda h, s, ii, jj: (jj[h * steps + s], 0)),
            ],
            out_specs=pl.BlockSpec((8, 128), lambda h, s, ii, jj: (h, 0)),
            scratch_shapes=[pltpu.VMEM((1, 1), jnp.float32)],
        ),
        compiler_params=pltpu.CompilerParams(
            dimension_semantics=("parallel", "arbitrary"),
            vmem_limit_bytes=budget,
        ),
        cost_estimate=cost,
    )(i_idx, j_idx, pn_p, pn_p)

    total = jnp.sum(partials.reshape(n_splits, 8, 128)[:, 0, 0])
    return 0.5 * total / jnp.float32(n * n)


def _reference_loss(prototypes):
    # Pure-JAX reference matching the PyTorch module.
    p = prototypes.astype(jnp.float32)
    norms = jnp.sqrt(jnp.sum(p * p, axis=-1, keepdims=True))
    pn = p / jnp.maximum(norms, _EPS)
    sim = jnp.dot(pn, pn.T, precision=lax.Precision.HIGHEST)
    nn = sim.shape[0]
    mask = 1.0 - jnp.eye(nn, dtype=jnp.float32)
    return 0.5 * jnp.mean(sim * sim * mask)


if __name__ == "__main__":
    # 1) Small single-tile case (8 prototypes, hidden dim 32): diagonal tile only.
    prototypes = jax.random.normal(jax.random.PRNGKey(0), (8, 32), dtype=jnp.float32)
    loss = jax.block_until_ready(proto_similarity_loss(prototypes))
    ref = jax.block_until_ready(_reference_loss(prototypes))
    assert jnp.allclose(loss, ref, rtol=1e-4, atol=1e-6), (loss, ref)

    # 2) Non-aligned multi-block triangular path: padding, 2-way split, 2x symmetry,
    #    exact diagonal masking.
    p2 = jax.random.normal(jax.random.PRNGKey(1), (37, 20), dtype=jnp.float32)
    l2 = jax.block_until_ready(proto_similarity_loss(p2, tile=16))
    r2 = jax.block_until_ready(_reference_loss(p2))
    assert jnp.allclose(l2, r2, rtol=1e-4, atol=1e-6), (l2, r2)

    # 3) Gram-trick path (N >> D): multi-block reduction with padding.
    p3 = jax.random.normal(jax.random.PRNGKey(2), (300, 20), dtype=jnp.float32)
    l3 = jax.block_until_ready(proto_similarity_loss(p3, tile=128))
    r3 = jax.block_until_ready(_reference_loss(p3))
    assert jnp.allclose(l3, r3, rtol=1e-4, atol=1e-6), (l3, r3)

    # 4) bf16 compute path (full-rate MXU on v5e); looser tolerance by construction.
    p4 = jax.random.normal(jax.random.PRNGKey(3), (64, 48), dtype=jnp.float32)
    l4 = jax.block_until_ready(
        proto_similarity_loss(p4, tile=64, compute_dtype=jnp.bfloat16))
    r4 = jax.block_until_ready(_reference_loss(p4))
    assert jnp.allclose(l4, r4, rtol=2e-2, atol=1e-4), (l4, r4)

    print("KERNEL_OK")
</pallas_src>

<mosaic_0001>
module attributes {stable_mosaic.version = 11 : i64} {
  func.func @_tri_pairs_kernel(%arg0: i32, %arg1: i32, %arg2: memref<1xi32, #tpu.memory_space<smem>>, %arg3: memref<1xi32, #tpu.memory_space<smem>>, %arg4: memref<8x128xf32, #tpu.memory_space<vmem>>, %arg5: memref<8x128xf32, #tpu.memory_space<vmem>>, %arg6: memref<8x128xf32, #tpu.memory_space<vmem>>, %arg7: memref<1x1xf32, #tpu.memory_space<vmem>>) attributes {dimension_semantics = [#tpu.dimension_semantics<parallel>, #tpu.dimension_semantics<arbitrary>], iteration_bounds = array<i64: 1, 1>, scalar_prefetch = 2 : i64, scratch_operands = 1 : i64, tpu.core_type = #tpu.core_type<tc>, window_params = [{transform_indices = @transform_0, window_bounds = array<i64: 8, 128>}, {transform_indices = @transform_1, window_bounds = array<i64: 8, 128>}, {transform_indices = @transform_2, window_bounds = array<i64: 8, 128>}]} {
    %c1_i32 = arith.constant 1 : i32
    %0 = arith.muli %arg0, %c1_i32 : i32
    %1 = arith.addi %0, %arg1 : i32
    %c0_i32 = arith.constant 0 : i32
    %2 = arith.cmpi eq, %arg1, %c0_i32 : i32
    %3 = arith.extui %2 : i1 to i32
    %c0_i32_0 = arith.constant 0 : i32
    %4 = arith.cmpi ne, %3, %c0_i32_0 : i32
    scf.if %4 {
      %cst_9 = arith.constant 0.000000e+00 : f32
      %25 = vector.broadcast %cst_9 : f32 to vector<1x1xf32>
      %c0_10 = arith.constant 0 : index
      %c0_11 = arith.constant 0 : index
      %26 = vector.load %arg7[%c0_10, %c0_11] : memref<1x1xf32, #tpu.memory_space<vmem>>, vector<1x1xf32>
      tpu.vector_store %arg7[%c0_10, %c0_11], %25 {strides = array<i32>} : memref<1x1xf32, #tpu.memory_space<vmem>>, vector<1x1xf32>,
    } else {
    }
    %5 = arith.index_cast %1 : i32 to index
    %6 = memref.load %arg2[%5] : memref<1xi32, #tpu.memory_space<smem>>
    %7 = arith.index_cast %1 : i32 to index
    %8 = memref.load %arg3[%7] : memref<1xi32, #tpu.memory_space<smem>>
    %c1_i32_1 = arith.constant 1 : i32
    %9 = arith.cmpi slt, %1, %c1_i32_1 : i32
    %10 = arith.cmpi eq, %6, %8 : i32
    %c0 = arith.constant 0 : index
    %c0_2 = arith.constant 0 : index
    %11 = vector.load %arg4[%c0, %c0_2] : memref<8x128xf32, #tpu.memory_space<vmem>>, vector<8x128xf32>
    %c0_3 = arith.constant 0 : index
    %c0_4 = arith.constant 0 : index
    %12 = vector.load %arg5[%c0_3, %c0_4] : memref<8x128xf32, #tpu.memory_space<vmem>>, vector<8x128xf32>
    %cst = arith.constant dense<0.000000e+00> : vector<8x8xf32>
    %13 = tpu.matmul %11, %12, %cst {dimension_numbers = #tpu.dot_dimension_numbers<[1], [1], [0], [0], [0, 0, 1, 0], [], []>} : vector<8x128xf32>, vector<8x128xf32>, vector<8x8xf32> -> vector<8x8xf32>
    %14 = arith.mulf %13, %13 : vector<8x8xf32>
    %true = arith.constant true
    %15 = arith.xori %10, %true : i1
    %16 = arith.andi %9, %15 : i1
    %17 = arith.extui %16 : i1 to i32
    %c0_i32_5 = arith.constant 0 : i32
    %18 = arith.cmpi ne, %17, %c0_i32_5 : i32
    scf.if %18 {
      %cst_9 = arith.constant dense<0.000000e+00> : vector<8xf32>
      %25 = vector.multi_reduction <add>, %14, %cst_9 [1] : vector<8x8xf32> to vector<8xf32>
      %26 = vector.shape_cast %25 : vector<8xf32> to vector<8x1xf32>
      %cst_10 = arith.constant dense<0.000000e+00> : vector<1xf32>
      %27 = vector.multi_reduction <add>, %26, %cst_10 [0] : vector<8x1xf32> to vector<1xf32>
      %28 = vector.shape_cast %27 : vector<1xf32> to vector<1x1xf32>
      %c0_11 = arith.constant 0 : index
      %c0_12 = arith.constant 0 : index
      %29 = vector.load %arg7[%c0_11, %c0_12] : memref<1x1xf32, #tpu.memory_space<vmem>>, vector<1x1xf32>
      %cst_13 = arith.constant 2.000000e+00 : f32
      %30 = vector.broadcast %cst_13 : f32 to vector<1x1xf32>
      %31 = arith.mulf %30, %28 : vector<1x1xf32>
      %32 = arith.addf %29, %31 : vector<1x1xf32>
      %c0_14 = arith.constant 0 : index
      %c0_15 = arith.constant 0 : index
      %33 = vector.load %arg7[%c0_14, %c0_15] : memref<1x1xf32, #tpu.memory_space<vmem>>, vector<1x1xf32>
      tpu.vector_store %arg7[%c0_14, %c0_15], %32 {strides = array<i32>} : memref<1x1xf32, #tpu.memory_space<vmem>>, vector<1x1xf32>,
    } else {
    }
    %19 = arith.andi %9, %10 : i1
    %20 = arith.extui %19 : i1 to i32
    %c0_i32_6 = arith.constant 0 : i32
    %21 = arith.cmpi ne, %20, %c0_i32_6 : i32
    scf.if %21 {
      %25 = tpu.iota {dimensions = array<i32: 0>} : vector<8x8xi32>
      %26 = tpu.iota {dimensions = array<i32: 1>} : vector<8x8xi32>
      %27 = arith.cmpi eq, %25, %26 : vector<8x8xi32>
      %cst_9 = arith.constant 0.000000e+00 : f32
      %28 = vector.broadcast %cst_9 : f32 to vector<8x8xf32>
      %29 = arith.select %27, %28, %14 : vector<8x8xi1>, vector<8x8xf32>
      %cst_10 = arith.constant dense<0.000000e+00> : vector<8xf32>
      %30 = vector.multi_reduction <add>, %29, %cst_10 [1] : vector<8x8xf32> to vector<8xf32>
      %31 = vector.shape_cast %30 : vector<8xf32> to vector<8x1xf32>
      %cst_11 = arith.constant dense<0.000000e+00> : vector<1xf32>
      %32 = vector.multi_reduction <add>, %31, %cst_11 [0] : vector<8x1xf32> to vector<1xf32>
      %33 = vector.shape_cast %32 : vector<1xf32> to vector<1x1xf32>
      %c0_12 = arith.constant 0 : index
      %c0_13 = arith.constant 0 : index
      %34 = vector.load %arg7[%c0_12, %c0_13] : memref<1x1xf32, #tpu.memory_space<vmem>>, vector<1x1xf32>
      %35 = arith.addf %34, %33 : vector<1x1xf32>
      %c0_14 = arith.constant 0 : index
      %c0_15 = arith.constant 0 : index
      %36 = vector.load %arg7[%c0_14, %c0_15] : memref<1x1xf32, #tpu.memory_space<vmem>>, vector<1x1xf32>
      tpu.vector_store %arg7[%c0_14, %c0_15], %35 {strides = array<i32>} : memref<1x1xf32, #tpu.memory_space<vmem>>, vector<1x1xf32>,
    } else {
    }
    %c0_i32_7 = arith.constant 0 : i32
    %22 = arith.cmpi eq, %arg1, %c0_i32_7 : i32
    %23 = arith.extui %22 : i1 to i32
    %c0_i32_8 = arith.constant 0 : i32
    %24 = arith.cmpi ne, %23, %c0_i32_8 : i32
    scf.if %24 {
      %c0_9 = arith.constant 0 : index
      %c0_10 = arith.constant 0 : index
      %25 = vector.load %arg7[%c0_9, %c0_10] : memref<1x1xf32, #tpu.memory_space<vmem>>, vector<1x1xf32>
      %26 = vector.shape_cast %25 : vector<1x1xf32> to vector<1x1xf32>
      %27 = vector.broadcast %26 : vector<1x1xf32> to vector<8x128xf32>
      %c0_11 = arith.constant 0 : index
      %c0_12 = arith.constant 0 : index
      %28 = vector.load %arg6[%c0_11, %c0_12] : memref<8x128xf32, #tpu.memory_space<vmem>>, vector<8x128xf32>
      tpu.vector_store %arg6[%c0_11, %c0_12], %27 {strides = array<i32>} : memref<8x128xf32, #tpu.memory_space<vmem>>, vector<8x128xf32>,
    } else {
    }
    return
  }
  func.func @transform_0(%arg0: i32, %arg1: i32, %arg2: memref<1xi32, #tpu.memory_space<smem>>, %arg3: memref<1xi32, #tpu.memory_space<smem>>) -> (i32, i32) {
    %c1_i32 = arith.constant 1 : i32
    %0 = arith.muli %arg0, %c1_i32 : i32
    %1 = arith.addi %0, %arg1 : i32
    %2 = arith.index_cast %1 : i32 to index
    %3 = memref.load %arg2[%2] : memref<1xi32, #tpu.memory_space<smem>>
    %c0_i32 = arith.constant 0 : i32
    %c0_i32_0 = arith.constant 0 : i32
    return %3, %c0_i32 : i32, i32
  }
  func.func @transform_1(%arg0: i32, %arg1: i32, %arg2: memref<1xi32, #tpu.memory_space<smem>>, %arg3: memref<1xi32, #tpu.memory_space<smem>>) -> (i32, i32) {
    %c1_i32 = arith.constant 1 : i32
    %0 = arith.muli %arg0, %c1_i32 : i32
    %1 = arith.addi %0, %arg1 : i32
    %2 = arith.index_cast %1 : i32 to index
    %3 = memref.load %arg3[%2] : memref<1xi32, #tpu.memory_space<smem>>
    %c0_i32 = arith.constant 0 : i32
    %c0_i32_0 = arith.constant 0 : i32
    return %3, %c0_i32 : i32, i32
  }
  func.func @transform_2(%arg0: i32, %arg1: i32, %arg2: memref<1xi32, #tpu.memory_space<smem>>, %arg3: memref<1xi32, #tpu.memory_space<smem>>) -> (i32, i32) {
    %c0_i32 = arith.constant 0 : i32
    %c0_i32_0 = arith.constant 0 : i32
    return %arg0, %c0_i32 : i32, i32
  }
}

</mosaic_0001>

<bundles_post_ra>
// kernel: tpu_custom_call.1
= control target key start
LH: loop header
LB: loop body
LE: loop exit
PB: predicated region body
PF: predicated region fallthrough
CT: control target
= control target key end

     0   :  { %11 = vsyncpa [#allocation7], 0  ;;  %s385_s0 = inlined_call_operand.<no memory space> [shape: s32[1], index: 0, kind: input, shape index: {}]   ;;  %s386_s1 = inlined_call_operand.<no memory space> [shape: s32[1], index: 1, kind: input, shape index: {}]   ;;  %s387_s2 = inlined_call_operand.hbm [shape: f32[8,128], index: 2, kind: input, shape index: {}]   ;;  %s388_s3 = inlined_call_operand.hbm [shape: f32[8,128], index: 3, kind: input, shape index: {}]   ;;  %s389_s4 = inlined_call_operand.hbm [shape: f32[8,128], index: 4, kind: output, shape index: {}]  }
   0x1   :  { %12 = vsyncpa [#allocation10], 0 }
   0x2   :  { %13 = vsyncpa [#allocation8], 0  ;;  %s214_s17 = sshll.u32 %s385_s0, 7  ;;  %s305_s21 = smov [#allocation6]  }
   0x3   :  { %s22_s20 = scalar_lea.hbm %s387_s2, %s214_s17  ;;  %s24_s22 = sshll.u32 %s305_s21, 4  ;;  %s25_s22 = int_to_ptr.vmem [resolvable:$true] %s24_s22 }
   0x4   :  { %s215_s25 = sshll.u32 %s386_s1, 7  ;;  %s235_s26 = scalar_lea.hbm %s22_s20, 128 }
   0x5   :  { %p236_p0 = scmp.ne.s32.totalorder %s22_s20, %s235_s26  ;;  %s237_s29 = scalar_lea.hbm %s387_s2, 128 }
   0x6   :  { %p238_p1 = scmp.lt.s32.totalorder %s22_s20, %s387_s2  ;;  %p239_p2 = scmp.lt.s32.totalorder %s237_s29, %s235_s26 }
   0x8   :  { %p240_p3 = por %p239_p2, %p238_p1 }
   0xa   :  { %p241_p4 = pnand %p240_p3, %p236_p0 }
   0xc   :  { %244 = shalt.err (!%p241_p4)
}
   0xd   :  { %s245_s6 = scalar_lea.vmem %s25_s22, 128  ;;  %p250_p6 = scmp.lt.s32.totalorder %s25_s22, %s25_s22 }
   0xe   :  { %p246_p5 = scmp.ne.s32.totalorder %s25_s22, %s245_s6  ;;  %p251_p7 = scmp.lt.s32.totalorder %s245_s6, %s245_s6 }
  0x10   :  { %p252_p8 = por %p251_p7, %p250_p6 }
  0x12   :  { %p253_p9 = pnand %p252_p8, %p246_p5 }
  0x14   :  { %256 = shalt.err (!%p253_p9)
}
  0x15   :  { %27 = dma.hbm_to_vmem [thread:$0]  %s22_s20, 128, %s25_s22, [#allocation7]  }
  0x16   :  { %s36_s9 = scalar_lea.hbm %s388_s3, %s215_s25  ;;  %s306_s10 = smov [#allocation9]  }
  0x17   :  { %s38_s11 = sshll.u32 %s306_s10, 4  ;;  %s257_s2 = scalar_lea.hbm %s36_s9, 128  ;;  %s39_s11 = int_to_ptr.vmem [resolvable:$true] %s38_s11 }
  0x18   :  { %p258_p10 = scmp.ne.s32.totalorder %s36_s9, %s257_s2  ;;  %s259_s14 = scalar_lea.hbm %s388_s3, 128 }
  0x19   :  { %p260_p11 = scmp.lt.s32.totalorder %s36_s9, %s388_s3  ;;  %p261_p12 = scmp.lt.s32.totalorder %s259_s14, %s257_s2 }
  0x1b   :  { %p262_p13 = por %p261_p12, %p260_p11 }
  0x1d   :  { %p263_p0 = pnand %p262_p13, %p258_p10 }
  0x1f   :  { %266 = shalt.err (!%p263_p0)
}
  0x20   :  { %s267_s17 = scalar_lea.vmem %s39_s11, 128  ;;  %p272_p2 = scmp.lt.s32.totalorder %s39_s11, %s39_s11 }
  0x21   :  { %p268_p1 = scmp.ne.s32.totalorder %s39_s11, %s267_s17  ;;  %p273_p3 = scmp.lt.s32.totalorder %s267_s17, %s267_s17 }
  0x23   :  { %p274_p4 = por %p273_p3, %p272_p2 }
  0x25   :  { %p275_p5 = pnand %p274_p4, %p268_p1 }
  0x27   :  { %278 = shalt.err (!%p275_p5)
}
  0x28   :  { %41 = dma.hbm_to_vmem [thread:$0]  %s36_s9, 128, %s39_s11, [#allocation10]  }
  0x29   :  { %299 = dma.done.wait [#allocation7], 128  }
  0x2a   :  { %300 = vsyncadd [#allocation7], 4294967168 }
  0x2b   :  { %301 = dma.done.wait [#allocation10], 128  }
  0x2c   :  { %302 = vsyncadd [#allocation10], 4294967168  ;;  %vm57_vm0 = vcmask 0   ;;  %p62_p6 = scmp.eq.s32.totalorder %s385_s0, %s386_s1  ;;  %v307_v0 = vmov 0.0   ;;  %vm308_vm1 = vmmov 0   ;;  %v64_v1 = vld [vmem:[#allocation9] sm:$0xff]  ;;  %p136_p7 = scmp.ne.s32.totalorder %s385_s0, %s386_s1 }
  0x2d   :  { %58 = vst.msk [vmem:[#allocation2] sm:$0x1] %vm57_vm0, %v307_v0  ;;  %223 = vmatprep.subr.mxu0 %v307_v0  ;;  %225 = vmatprep.mubr.msk.f32.mxu0 %vm308_vm1, %v307_v0  ;;  %v63_v2 = vld [vmem:[#allocation6] sm:$0xff]  ;;  %vm141_vm2 = vcmask (%p136_p7), 64512  }
  0x2e   :  { %224 = vmatpush3.xpose.msra.mxu0 %v64_v1 }
  0x31   :  { %226 = vmatmul.mubr.f32.vlgmr.msra.gmra.mxu0 %v63_v2 }
  0x34   :  { %v151_v14 = vld [vmem:[#allocation2] sm:$0x1] (%p136_p7) }
  0xef   :  { %140 = sbr.rel (!%p136_p7) target bundleno = 400 (0x190), region = 25 }
  0xf1   :  { %v131_v3 = vpop.f32.mrf.mxu0 }
  0xf2   :  { %v135_v4 = vmul.f32 %v131_v3, %v131_v3 }
  0xf3   :  { %v227_v5 = vpop.f32.mrf.mxu0 }
  0xf4   :  { %v142_v6 = vsel %vm141_vm2, %v135_v4, 0.0 }
  0xf5   :  { %143 = vadd.xlane.f32.xlu0 %v142_v6 }
 0x17e   :  { %v144_v7 = vpop.xlane.xlu0 %143 }
 0x17f   :  { %v145_v8 = vrot.slane %v144_v7, 4 }
 0x181   :  { %v146_v9 = vadd.f32 %v145_v8, %v144_v7 }
 0x183   :  { %v147_v10 = vrot.slane %v146_v9, 2 }
 0x185   :  { %v148_v11 = vadd.f32 %v147_v10, %v146_v9 }
 0x187   :  { %v149_v12 = vrot.slane %v148_v11, 1 }
 0x189   :  { %v150_v13 = vadd.f32 %v149_v12, %v148_v11 }
 0x18b   :  { %v152_v15 = vmul.f32 2.0, %v150_v13 }
 0x18d   :  { %v153_v16 = vadd.f32 %v152_v15, %v151_v14 }
 0x18f   :  { %155 = vst.msk [vmem:[#allocation2] sm:$0x1] %vm57_vm0, %v153_v16 }
 0x190 PF:  { %159 = sbr.rel (!%p62_p6) target bundleno = 560 (0x230), region = 29  ;;  %v160_v17 = vlaneseq (%p62_p6)  ;;  %vm166_vm3 = vcmask (%p62_p6), 64512  }
 0x192   :  { %v161_v18 = vshrl.u32 (%p62_p6), %v160_v17, 7  ;;  %v163_v19 = vand.u32 (%p62_p6), 127, %v160_v17 }
 0x194   :  { %vm164_vm4 = vcmp.eq.s32.totalorder (%p62_p6), %v161_v18, %v163_v19 }
 0x195   :  { %v165_v20 = vsel %vm164_vm4, 0.0, %v135_v4 }
 0x196   :  { %v167_v21 = vsel %vm166_vm3, %v165_v20, 0.0  ;;  %v176_v28 = vld [vmem:[#allocation2] sm:$0x1] }
 0x197   :  { %168 = vadd.xlane.f32.xlu0 %v167_v21 }
 0x220   :  { %v169_v22 = vpop.xlane.xlu0 %168 }
 0x221   :  { %v170_v23 = vrot.slane %v169_v22, 4 }
 0x223   :  { %v171_v24 = vadd.f32 %v170_v23, %v169_v22 }
 0x225   :  { %v172_v25 = vrot.slane %v171_v24, 2 }
 0x227   :  { %v173_v26 = vadd.f32 %v172_v25, %v171_v24 }
 0x229   :  { %v174_v27 = vrot.slane %v173_v26, 1 }
 0x22b   :  { %v175_v29 = vadd.f32 %v174_v27, %v173_v26 }
 0x22d   :  { %v177_v30 = vadd.f32 %v176_v28, %v175_v29 }
 0x22f   :  { %179 = vst.msk [vmem:[#allocation2] sm:$0x1] %vm57_vm0, %v177_v30 }
 0x230 PF:  { %v309_v32 = vmov 0   ;;  %s310_s0 = smov [#allocation11]  }
 0x231   :  { %234 = vset.pattern.permute.xlu0 %v309_v32  ;;  %s200_s1 = sshll.u32 %s310_s0, 4  ;;  %s201_s1 = int_to_ptr.vmem [resolvable:$true] %s200_s1 }
 0x232   :  { %s279_s29 = scalar_lea.vmem %s201_s1, 128  ;;  %p284_p9 = scmp.lt.s32.totalorder %s201_s1, %s201_s1 }
 0x233   :  { %p280_p8 = scmp.ne.s32.totalorder %s201_s1, %s279_s29  ;;  %p285_p10 = scmp.lt.s32.totalorder %s279_s29, %s279_s29 }
 0x235   :  { %p286_p11 = por %p285_p10, %p284_p9 }
 0x236   :  { %v218_v31 = vld [vmem:[#allocation2] ss:$0 sm:$0xff] }
 0x237   :  { %190 = vperm.xlu0 %234, %v218_v31   ;;  %p287_p12 = pnand %p286_p11, %p280_p8 }
 0x2b2   :  { %v191_v33 = vpop.permute.xlu0 %190 }
 0x2b3   :  { %193 = vst [vmem:[#allocation11] sm:$0xff] %v191_v33 }
 0x2b4   :  { %290 = shalt.err (!%p287_p12)
}
 0x2b5   :  { %203 = dma.vmem_to_hbm [thread:$0]  %s201_s1, 128, %s389_s4, [#allocation8]  }
 0x2b6   :  { %303 = dma.done.wait [#allocation8], 128  }
 0x2b7   :  { %304 = vsyncadd [#allocation8], 4294967168 }
 0x2b8   :  { %207 = vsyncpa [#allocation7], 1 }
 0x2b9   :  { %208 = vsyncpa [#allocation10], 1 }
 0x2ba   :  { %209 = vsyncpa [#allocation8], 1 }

</bundles_post_ra>
